<compile_context>
chip_gen: v5e
topology: v5e:2x2
jax: 0.10.0
libtpu: 0.0.40
codegen_flags: <defaults>
</compile_context>

<pallas_src>
import functools

import jax
import jax.numpy as jnp
from jax.experimental import pallas as pl
from jax.experimental.pallas import tpu as pltpu


_SUBLANE = 8


def _round_up(x, m):
    return (x + m - 1) // m * m


def _vmem_budget_bytes():
    """Returns (working-set budget, vmem_limit) derived from chip VMEM capacity."""
    try:
        cap = int(pltpu.get_tpu_info().vmem_capacity_bytes)
    except Exception:
        cap = 64 * 1024 * 1024          # conservative: v7x physical per-TC VMEM
    budget = int(cap * 0.60)            # input double-buffer + f32 temporaries
    limit = int(cap * 0.75)             # scoped-VMEM limit handed to Mosaic
    return budget, limit


def _entropy_partial_kernel(x_ref, o_ref, *, block_rows, batch):
    """Per batch tile: sum over valid rows of sum_c p*log p.

    x_ref: (tb, C) logits block (contiguous DMA of the original (B, C) layout).
    o_ref: (8, 1) f32 block; partial sum in row 0, zeros elsewhere.
    """
    i = pl.program_id(0)
    x = x_ref[...].astype(jnp.float32)
    # Fused entropy algebra: with z = x - max, e = exp(z), s = sum(e),
    #   sum_c p*log p = (sum_c e*z)/s - log(s)
    # so the divide / log only run once per row, not per element.
    m = jnp.max(x, axis=-1, keepdims=True)
    z = x - m
    e = jnp.exp(z)
    s = jnp.sum(e, axis=-1, keepdims=True)
    ez = jnp.sum(e * z, axis=-1, keepdims=True)
    plogp = ez / s - jnp.log(s)                                   # (tb, 1)

    # Mask the ragged tail tile: rows >= batch hold unspecified data and must
    # not contribute to the partial sum (jnp.where blocks NaN propagation).
    rid = i * block_rows + jax.lax.broadcasted_iota(jnp.int32, plogp.shape, 0)
    plogp = jnp.where(rid < batch, plogp, 0.0)

    part = jnp.sum(plogp)                                         # scalar
    row = jax.lax.broadcasted_iota(jnp.int32, (8, 1), 0)
    o_ref[...] = jnp.where(row == 0, part, 0.0)                   # one-hot (8, 1)


def conditional_entropy_loss(x):
    """x: [B, C] logits (dim=1 of the PyTorch module = class axis) -> scalar f32."""
    B, C = x.shape
    itemsize = jnp.dtype(x.dtype).itemsize
    budget, vmem_limit = _vmem_budget_bytes()

    # VMEM bytes per batch row: double-buffered input block + ~3 live
    # full-tile f32 temporaries (x_f32/z, e, e*z) in the kernel body.
    bytes_per_row = 2 * C * itemsize + 3 * C * 4
    tb = max(_SUBLANE, (budget // bytes_per_row) // _SUBLANE * _SUBLANE)
    # Keep at least 2 grid steps when the batch allows it so the "parallel"
    # axis spans both v7x TensorCores.
    tb = min(tb, _round_up(pl.cdiv(B, 2), _SUBLANE))
    tb = min(tb, B)                      # block == full dim is always legal
    grid = pl.cdiv(B, tb)

    partials = pl.pallas_call(
        functools.partial(_entropy_partial_kernel, block_rows=tb, batch=B),
        out_shape=jax.ShapeDtypeStruct((grid * 8, 1), jnp.float32),
        grid_spec=pltpu.PrefetchScalarGridSpec(
            num_scalar_prefetch=0,
            grid=(grid,),
            in_specs=[pl.BlockSpec((tb, C), lambda i: (i, 0))],
            out_specs=pl.BlockSpec((8, 1), lambda i: (i, 0)),
        ),
        compiler_params=pltpu.CompilerParams(
            dimension_semantics=("parallel",),
            vmem_limit_bytes=vmem_limit,
        ),
    )(x)

    # Non-first rows of every (8,1) block are zero, so a plain sum over the
    # handful of output values followed by -mean is exact and trivial.
    return -(jnp.sum(partials) / B)


def _reference(x):
    """Plain-JAX reference matching the PyTorch module."""
    logp = jax.nn.log_softmax(x, axis=1)
    p = jax.nn.softmax(x, axis=1)
    b = jnp.sum(p * logp, axis=1)
    return -1.0 * jnp.mean(b, axis=0)


if __name__ == "__main__":
    key = jax.random.PRNGKey(0)
    B, C = 16, 32
    x = jax.random.normal(key, (B, C), dtype=jnp.float32) * 3.0

    out = jax.block_until_ready(conditional_entropy_loss(x))
    ref = jax.block_until_ready(_reference(x))
    assert out.shape == ()
    assert jnp.allclose(out, ref, atol=1e-5, rtol=1e-5), (out, ref)

    # Ragged tail tile (B % tb != 0) — exercises the in-kernel masking.
    x2 = jax.random.normal(jax.random.PRNGKey(1), (50, 96), dtype=jnp.float32)
    out2 = jax.block_until_ready(conditional_entropy_loss(x2))
    ref2 = jax.block_until_ready(_reference(x2))
    assert jnp.allclose(out2, ref2, atol=1e-5, rtol=1e-5), (out2, ref2)

    # Wider class axis.
    x3 = jax.random.normal(jax.random.PRNGKey(2), (24, 256), dtype=jnp.float32)
    out3 = jax.block_until_ready(conditional_entropy_loss(x3))
    ref3 = jax.block_until_ready(_reference(x3))
    assert jnp.allclose(out3, ref3, atol=1e-5, rtol=1e-5), (out3, ref3)

    print("KERNEL_OK")
</pallas_src>

<mosaic_0001>
module attributes {stable_mosaic.version = 11 : i64} {
  func.func @_entropy_partial_kernel(%arg0: i32, %arg1: memref<8x32xf32, #tpu.memory_space<vmem>>, %arg2: memref<8x1xf32, #tpu.memory_space<vmem>>) attributes {dimension_semantics = [#tpu.dimension_semantics<parallel>], iteration_bounds = array<i64: 2>, scalar_prefetch = 0 : i64, scratch_operands = 0 : i64, tpu.core_type = #tpu.core_type<tc>, window_params = [{transform_indices = @transform_0, window_bounds = array<i64: 8, 32>}, {transform_indices = @transform_1, window_bounds = array<i64: 8, 1>}]} {
    %c0 = arith.constant 0 : index
    %c0_0 = arith.constant 0 : index
    %0 = vector.load %arg1[%c0, %c0_0] : memref<8x32xf32, #tpu.memory_space<vmem>>, vector<8x32xf32>
    %cst = arith.constant dense<0xFF800000> : vector<8xf32>
    %1 = vector.multi_reduction <maximumf>, %0, %cst [1] : vector<8x32xf32> to vector<8xf32>
    %2 = vector.shape_cast %1 : vector<8xf32> to vector<8x1xf32>
    %3 = vector.broadcast %2 : vector<8x1xf32> to vector<8x32xf32>
    %4 = arith.subf %0, %3 : vector<8x32xf32>
    %5 = math.exp %4 : vector<8x32xf32>
    %cst_1 = arith.constant dense<0.000000e+00> : vector<8xf32>
    %6 = vector.multi_reduction <add>, %5, %cst_1 [1] : vector<8x32xf32> to vector<8xf32>
    %7 = vector.shape_cast %6 : vector<8xf32> to vector<8x1xf32>
    %8 = arith.mulf %5, %4 : vector<8x32xf32>
    %cst_2 = arith.constant dense<0.000000e+00> : vector<8xf32>
    %9 = vector.multi_reduction <add>, %8, %cst_2 [1] : vector<8x32xf32> to vector<8xf32>
    %10 = vector.shape_cast %9 : vector<8xf32> to vector<8x1xf32>
    %11 = arith.divf %10, %7 : vector<8x1xf32>
    %12 = math.log %7 : vector<8x1xf32>
    %13 = arith.subf %11, %12 : vector<8x1xf32>
    %c8_i32 = arith.constant 8 : i32
    %14 = arith.muli %arg0, %c8_i32 : i32
    %15 = tpu.iota {dimensions = array<i32: 0>} : vector<8x1xi32>
    %16 = vector.broadcast %14 : i32 to vector<8x1xi32>
    %17 = arith.addi %16, %15 : vector<8x1xi32>
    %c16_i32 = arith.constant 16 : i32
    %18 = vector.broadcast %c16_i32 : i32 to vector<8x1xi32>
    %19 = arith.cmpi slt, %17, %18 : vector<8x1xi32>
    %cst_3 = arith.constant 0.000000e+00 : f32
    %20 = vector.broadcast %cst_3 : f32 to vector<8x1xf32>
    %21 = arith.select %19, %13, %20 : vector<8x1xi1>, vector<8x1xf32>
    %22 = vector.shape_cast %21 : vector<8x1xf32> to vector<1x8x1xf32>
    %cst_4 = arith.constant dense<0.000000e+00> : vector<1xf32>
    %23 = vector.multi_reduction <add>, %22, %cst_4 [1, 2] : vector<1x8x1xf32> to vector<1xf32>
    %24 = vector.shape_cast %23 : vector<1xf32> to vector<1x1x1xf32>
    %25 = vector.extract %24[0, 0, 0] : f32 from vector<1x1x1xf32>
    %26 = tpu.iota {dimensions = array<i32: 0>} : vector<8x1xi32>
    %c0_i32 = arith.constant 0 : i32
    %27 = vector.broadcast %c0_i32 : i32 to vector<8x1xi32>
    %28 = arith.cmpi eq, %26, %27 : vector<8x1xi32>
    %cst_5 = arith.constant 0.000000e+00 : f32
    %29 = vector.broadcast %25 : f32 to vector<8x1xf32>
    %30 = vector.broadcast %cst_5 : f32 to vector<8x1xf32>
    %31 = arith.select %28, %29, %30 : vector<8x1xi1>, vector<8x1xf32>
    %c0_6 = arith.constant 0 : index
    %c0_7 = arith.constant 0 : index
    %32 = vector.load %arg2[%c0_6, %c0_7] : memref<8x1xf32, #tpu.memory_space<vmem>>, vector<8x1xf32>
    tpu.vector_store %arg2[%c0_6, %c0_7], %31 {strides = array<i32>} : memref<8x1xf32, #tpu.memory_space<vmem>>, vector<8x1xf32>,
    return
  }
  func.func @transform_0(%arg0: i32) -> (i32, i32) {
    %c0_i32 = arith.constant 0 : i32
    %c0_i32_0 = arith.constant 0 : i32
    return %arg0, %c0_i32 : i32, i32
  }
  func.func @transform_1(%arg0: i32) -> (i32, i32) {
    %c0_i32 = arith.constant 0 : i32
    %c0_i32_0 = arith.constant 0 : i32
    return %arg0, %c0_i32 : i32, i32
  }
}

</mosaic_0001>

<bundles_post_ra>
// kernel: tpu_custom_call.1
= control target key start
LH: loop header
LB: loop body
LE: loop exit
PB: predicated region body
PF: predicated region fallthrough
CT: control target
= control target key end

     0   :  { %6 = vsyncpa [#allocation3], 0  ;;  %s485_s0 = inlined_call_operand.hbm [shape: f32[16,32], index: 0, kind: input, shape index: {}]   ;;  %s486_s1 = inlined_call_operand.vmem [shape: f32[16,1], index: 1, kind: output, shape index: {}]  }
   0x1   :  { %8 = vsyncpa [#allocation3 + $0x1], 0  ;;  %s388_s6 = smov 0   ;;  %s390_s7 = smov 0  }
   0x2   :  { %s392_s8 = smov 0   ;;  %s394_s9 = smov 0  }
   0x3 LB: > { %s407_s10 = sadd.s32 4294967295, %s376_s9   ;;  %s410_s11 = sadd.s32 1, %s376_s9   ;;  %s376_s9 = sphi %s394_s9, %s493_s9   ;;  %s372_s8 = sphi %s392_s8, %s492_s8   ;;  %s368_s7 = sphi %s390_s7, %s491_s7   ;;  %s364_s6 = sphi %s388_s6, %s490_s6  }
   0x4   : > { %s18_s12 = ssub.s32 %s376_s9, %s410_s11  ;;  %s21_s13 = sadd.s32 1, %s372_s8 }
   0x5   : > { %p19_p0 = scmp.eq.s32.totalorder %s18_s12, 0  ;;  %p28_p1 = scmp.ne.s32.totalorder %s372_s8, %s368_s7 }
   0x6   : > { %p29_p2 = scmp.eq.s32.totalorder %s376_s9, 0  ;;  %p34_p3 = scmp.ne.s32.totalorder %s368_s7, %s364_s6 }
   0x7   : > { %s420_s14 = scalar_select %p19_p0, %s372_s8, %s21_s13  }
   0x8   : > { %p422_p4 = por %p29_p2, %p28_p1  ;;  %p35_p5 = scmp.eq.s32.totalorder %s407_s10, 0 }
   0x9   : > { %p273_p6 = scmp.lt.s32.totalorder %s376_s9, 2  ;;  %s84_s17 = sand.u32 1, %s372_s8  }
   0xa   : > { %p428_p7 = por %p35_p5, %p34_p3  ;;  %s257_s18 = sshll.u32 %s84_s17, 3 }
   0xb   : > { %s258_s19 = sshll.u32 %s376_s9, 3  ;;  %s88_s23 = scalar_lea.vmem [#allocation2], %s257_s18 }
   0xc   : > { %s92_s22 = scalar_lea.hbm %s485_s0, %s258_s19  ;;  %s96_s24 = sshll.u32 %s88_s23, 4  ;;  %s97_s24 = int_to_ptr.vmem [resolvable:$true] %s96_s24 }
   0xd   : > { %s94_s25 = sshll.u32 %s92_s22, 4  ;;  %p439_p8 = pnand %p273_p6, %p422_p4  ;;  %s95_s25 = int_to_ptr.hbm [resolvable:$true] %s94_s25 }
   0xe   : > { %p259_p9 = scmp.ge.s32.totalorder %s376_s9, 1  ;;  %p101_p10 = scmp.lt.s32.totalorder %s376_s9, 3 }
   0xf   : > { %s85_s27 = scalar_lea.sflag [#allocation3], %s84_s17  ;;  %s312_s28 = sshra.s32 %s95_s25, 4  ;;  %s313_s28 = int_to_ptr.hbm [resolvable:$true] %s312_s28 }
  0x10   : > { %s314_s29 = scalar_lea.hbm %s313_s28, 8  ;;  %p316_p12 = pneg %p439_p8 }
  0x11   : > { %p315_p11 = scmp.ne.s32.totalorder %s313_s28, %s314_s29  ;;  %s319_s3 = scalar_lea.hbm %s485_s0, 16 }
  0x12   : > { %p320_p1 = scmp.lt.s32.totalorder %s313_s28, %s485_s0  ;;  %p321_p2 = scmp.lt.s32.totalorder %s319_s3, %s314_s29 }
  0x13   : > { %p317_p13 = pnand %p316_p12, %p315_p11 }
  0x14   : > { %p322_p3 = por %p321_p2, %p320_p1 }
  0x15   : > { %p318_p0 = pneg %p317_p13 }
  0x17   : > { %p323_p4 = pnand %p322_p3, %p318_p0 }
  0x19   : > { %326 = shalt.err (!%p323_p4)
}
  0x1a   : > { %272 = dma.hbm_to_vmem [thread:$0]  (!%p439_p8), %s95_s25, 128, %s97_s24, %s85_s27  }
  0x1b   : > { %p102_p5 = pnand %p259_p9, %p101_p10 }
  0x1c   : > { %s107_s6 = sand.u32 (!%p102_p5), 1, %s368_s7  }
  0x1d   : > { %105 = sbr.rel (%p102_p5) target bundleno = 485 (0x1e5), region = 24  ;;  %s260_s12 = sshll.u32 (!%p102_p5), %s107_s6, 3 }
  0x1e   : > { %s108_s13 = scalar_lea.sflag (!%p102_p5), [#allocation3], %s107_s6  ;;  %s111_s15 = scalar_lea.vmem (!%p102_p5), [#allocation2], %s260_s12 }
  0x22   : > { %359 = dma.done.wait (%p428_p7), %s108_s13, 128  }
  0x23   : > { %361 = vsyncadd (%p428_p7), %s108_s13, 4294967168  ;;  %vm135_vm0 = vcmask 261120   ;;  %v134_v0 = vld [vmem:[%s111_s15] sm:$0xff]  ;;  %v168_v11 = vlaneseq  ;;  %s262_s9 = sshll.u32 %s407_s10, 3  ;;  %vm174_vm6 = vcmask 7168   ;;  %p130_p6 = scmp.lt.s32.totalorder %s407_s10, 1 }
  0x24   : > { %v136_v1 = vsel %vm135_vm0, %v134_v0, -inf  ;;  %v170_v18 = vstv %s262_s9 }
  0x25   : > { %137 = vmax.xlane.f32.xlu0 %v136_v1  ;;  %v169_v15 = vshrl.u32 %v168_v11, 7  ;;  %s495_s10 = smov (!%p130_p6, %s407_s10), 1 }
  0x26   : > { %s261_s16 = sshll.u32 %s495_s10, 3 }
  0x27   : > { %v171_v22 = vadd.s32 %v170_v18, %v169_v15  ;;  %vm185_vm7 = vcmp.eq.s32.totalorder %v169_v15, 0  ;;  %s133_s19 = scalar_lea.vmem %s486_s1, %s261_s16 }
  0x29   : > { %vm172_vm5 = vcmp.lt.s32.totalorder %v171_v22, 16 }
  0x98   : > { %v138_v2 = vpop.xlane.xlu0 %137 }
  0x99   : > { %v139_v3 = vsub.f32 %v134_v0, %v138_v2 }
  0x9b   : > { %v140_v4 = vmul.f32 1.442695, %v139_v3 }
  0x9d   : > { %306 = vpow2.f32 %v140_v4 }
  0xa3   : > { %v307_v5 = vpop.eup %306 }
  0xa4   : > { %v142_v6 = vsel %vm135_vm0, %v307_v5, 0.0  ;;  %v145_v7 = vmul.f32 %v307_v5, %v139_v3 }
  0xa5   : > { %143 = vadd.xlane.f32.xlu0 %v142_v6 }
  0xa6   : > { %v146_v8 = vsel %vm135_vm0, %v145_v7, 0.0 }
  0xa7   : > { %147 = vadd.xlane.f32.xlu1 %v146_v8 }
 0x118   : > { %v144_v9 = vpop.xlane.xlu0 %143 }
 0x119   : > { %308 = vrcp.f32 %v144_v9  ;;  %v160_v14 = vand.u32 2147483648, %v144_v9  ;;  %v158_v17 = vand.u32 2147483647, %v144_v9  ;;  %vm154_vm2 = vweird.f32 %v144_v9 }
 0x11a   : > { %310 = vlog2.f32 %v144_v9  ;;  %v148_v24 = vpop.xlane.xlu1 %147 }
 0x11b   : > { %v161_v21 = vor.u32 1.1754944e-38, %v160_v14  ;;  %vm159_vm4 = vcmp.eq.f32.partialorder %v158_v17, 8.507059e+37 }
 0x11f   : > { %v309_v10 = vpop.eup %308 }
 0x120   : > { %v150_v12 = vmul.f32 %v309_v10, %v144_v9  ;;  %vm155_vm1 = vweird.f32 %v309_v10  ;;  %v311_v20 = vpop.eup %310 }
 0x121   : > { %vm156_vm3 = vmor %vm154_vm2, %vm155_vm1  ;;  %v165_v27 = vmul.f32 0.6931472, %v311_v20 }
 0x122   : > { %v151_v13 = vsub.f32 1.0, %v150_v12 }
 0x124   : > { %v152_v16 = vmul.f32 %v309_v10, %v151_v13 }
 0x126   : > { %v153_v19 = vadd.f32 %v309_v10, %v152_v16 }
 0x128   : > { %v157_v23 = vsel %vm156_vm3, %v309_v10, %v153_v19 }
 0x129   : > { %v162_v25 = vsel %vm159_vm4, %v161_v21, %v157_v23 }
 0x12a   : > { %v163_v26 = vmul.f32 %v162_v25, %v148_v24 }
 0x12c   : > { %v166_v28 = vsub.f32 %v163_v26, %v165_v27 }
 0x12e   : > { %v173_v29 = vsel %vm172_vm5, %v166_v28, 0.0 }
 0x12f   : > { %v175_v30 = vsel %vm174_vm6, %v173_v29, 0.0 }
 0x130   : > { %176 = vadd.xlane.f32.xlu1 %v175_v30 }
 0x1a3   : > { %v177_v31 = vpop.xlane.xlu1 %176 }
 0x1a4   : > { %v178_v32 = vrot.slane %v177_v31, 4 }
 0x1a6   : > { %v179_v33 = vadd.f32 %v178_v32, %v177_v31 }
 0x1a8   : > { %v180_v34 = vrot.slane %v179_v33, 2 }
 0x1aa   : > { %v181_v35 = vadd.f32 %v180_v34, %v179_v33 }
 0x1ac   : > { %v182_v36 = vrot.slane %v181_v35, 1 }
 0x1ae   : > { %v183_v37 = vadd.f32 %v182_v36, %v181_v35 }
 0x1b0   : > { %265 = vpush %v183_v37 }
 0x1e1   : > { %s266_s20 = spop %265 }
 0x1e2   : > { %v186_v38 = vstv %s266_s20 }
 0x1e3   : > { %v187_v39 = vsel %vm185_vm7, %v186_v38, 0.0 }
 0x1e4   : > { %188 = vst.msk [vmem:[%s133_s19] sm:$0xff] %vm174_vm6, %v187_v39 }
 0x1e5 PF: > { %p11_p7 = scmp.ge.s32.totalorder %s410_s11, 4   ;;  %s490_s6 = smov %s368_s7 }
 0x1e6   : > { %s491_s7 = smov %s372_s8  ;;  %s492_s8 = smov %s420_s14 }
 0x1e7   : > { %s493_s9 = smov %s410_s11  ;;  %13 = sbr.rel (!%p11_p7) target bundleno = 3 (0x3), region = 64 }
 0x1ec   :  { %208 = vsyncpa [#allocation3], 1 }
 0x1ed   :  { %210 = vsyncpa [#allocation3 + $0x1], 1 }

</bundles_post_ra>
